<compile_context>
chip_gen: v6e
topology: v6e:2x2x1
jax: 0.10.0
libtpu: 0.0.40
codegen_flags: <defaults>
</compile_context>

<pallas_src>
import functools

import jax
import jax.numpy as jnp
from jax.experimental import pallas as pl
from jax.experimental.pallas import tpu as pltpu


def _round_up(v: int, m: int) -> int:
    return (v + m - 1) // m * m


def _make_mlp_kernel(h_true: int, eps: float):
    inv_h = 1.0 / float(h_true)

    def mlp_kernel(x_ref, w1_ref, p1_ref, w2_ref, b2_ref, o_ref):
        # ---- fc1 on the MXU: bf16 operands (pre-cast in wrapper), f32 acc --
        h = jnp.dot(x_ref[...], w1_ref[...], preferred_element_type=jnp.float32)

        params = p1_ref[...]          # (8, H_pad) f32: rows 0/1/2 = b1/gamma/beta
        b1 = params[0:1, :]
        gamma = params[1:2, :]
        beta = params[2:3, :]
        h = h + b1                    # padded hidden columns remain exactly 0

        # ---- LayerNorm in f32 (single-pass moments over TRUE hidden width) -
        s1 = jnp.sum(h, axis=-1, keepdims=True)
        s2 = jnp.sum(h * h, axis=-1, keepdims=True)
        mu = s1 * inv_h
        var = s2 * inv_h - mu * mu
        rstd = jax.lax.rsqrt(var + eps)          # EUP
        scale = gamma * rstd                     # folded affine
        shift = beta - mu * scale
        h_act = jnp.maximum(h * scale + shift, 0.0)   # ReLU (padded cols stay 0)

        # ---- fc2 on the MXU: bf16 operands, f32 accumulation ---------------
        out = jnp.dot(
            h_act.astype(jnp.bfloat16),
            w2_ref[...],
            preferred_element_type=jnp.float32,
        ) + b2_ref[...]
        o_ref[...] = out.astype(o_ref.dtype)     # lane-dense (D_out padded to 128)

    return mlp_kernel


@functools.partial(jax.jit, static_argnames=("block_m", "eps"))
def mlp_forward(x, w1, b1, gamma, beta, w2, b2, *, block_m: int = 256, eps: float = 1e-5):
    B, D_in = x.shape
    H = w1.shape[1]
    D_out = w2.shape[1]

    # Lane-dense padding of all feature dims.
    D_in_p = _round_up(D_in, 128)
    H_p = _round_up(H, 128)
    D_out_p = _round_up(D_out, 128)

    # Batch tiling.
    tm = min(block_m, _round_up(B, 8))
    B_p = _round_up(B, tm)

    f32 = jnp.float32
    bf16 = jnp.bfloat16

    # Pre-cast MXU operands to bf16 in the wrapper (fuses with the pad; halves
    # HBM->VMEM bytes and removes per-grid-step in-kernel casts).
    xp = jnp.pad(x.astype(bf16), ((0, B_p - B), (0, D_in_p - D_in)))
    w1p = jnp.pad(w1.astype(bf16), ((0, D_in_p - D_in), (0, H_p - H)))
    w2p = jnp.pad(w2.astype(bf16), ((0, H_p - H), (0, D_out_p - D_out)))
    b2p = jnp.pad(b2.reshape(1, -1).astype(f32), ((0, 0), (0, D_out_p - D_out)))

    # Pack b1 / gamma / beta into a single (8, H_pad) f32 slab -> one DMA.
    p1 = jnp.zeros((8, H_p), f32)
    p1 = p1.at[0, :H].set(b1.reshape(-1).astype(f32))
    p1 = p1.at[1, :H].set(gamma.reshape(-1).astype(f32))
    p1 = p1.at[2, :H].set(beta.reshape(-1).astype(f32))

    grid = (B_p // tm,)

    # Explicit VMEM budget: double-buffered activation tiles + resident params
    # + in-kernel f32 temporaries, with headroom; capped for v7x's 64 MiB/TC.
    vmem_need = (
        2 * tm * D_in_p * 2                       # x tiles (x2 buf, bf16)
        + 2 * tm * D_out_p * 4                    # out tiles (x2 buf, f32)
        + 2 * (D_in_p * H_p + H_p * D_out_p) * 2  # weights (bf16)
        + 2 * (8 * H_p + D_out_p) * 4             # param slabs (f32)
        + 3 * tm * H_p * 4                        # kernel temporaries (f32)
    )
    vmem_limit = int(min(64 * 1024 * 1024, max(8 * 1024 * 1024, vmem_need + (2 << 20))))

    out_p = pl.pallas_call(
        _make_mlp_kernel(H, eps),
        out_shape=jax.ShapeDtypeStruct((B_p, D_out_p), jnp.float32),
        grid_spec=pltpu.PrefetchScalarGridSpec(
            num_scalar_prefetch=0,
            grid=grid,
            in_specs=[
                pl.BlockSpec((tm, D_in_p), lambda i: (i, 0)),    # x tile (pipelined)
                pl.BlockSpec((D_in_p, H_p), lambda i: (0, 0)),   # w1 (VMEM-resident)
                pl.BlockSpec((8, H_p), lambda i: (0, 0)),        # b1/gamma/beta slab
                pl.BlockSpec((H_p, D_out_p), lambda i: (0, 0)),  # w2 (VMEM-resident)
                pl.BlockSpec((1, D_out_p), lambda i: (0, 0)),    # b2
            ],
            out_specs=pl.BlockSpec((tm, D_out_p), lambda i: (i, 0)),
        ),
        compiler_params=pltpu.CompilerParams(
            dimension_semantics=("parallel",),   # shards batch tiles across TCs (v7x)
            vmem_limit_bytes=vmem_limit,
        ),
    )(xp, w1p, p1, w2p, b2p)

    return out_p[:B, :D_out].astype(x.dtype)


def reference_forward(x, w1, b1, gamma, beta, w2, b2, *, mxu_bf16=False, eps=1e-5):
    if mxu_bf16:
        dot = lambda a, b: jnp.dot(a.astype(jnp.bfloat16), b.astype(jnp.bfloat16),
                                   preferred_element_type=jnp.float32)
    else:
        dot = lambda a, b: jnp.dot(a, b, preferred_element_type=jnp.float32)
    h = dot(x, w1) + b1
    mu = jnp.mean(h, axis=-1, keepdims=True)
    var = jnp.mean((h - mu) ** 2, axis=-1, keepdims=True)
    h = (h - mu) * jax.lax.rsqrt(var + eps) * gamma + beta
    h = jnp.maximum(h, 0.0)
    return dot(h, w2) + b2


if __name__ == "__main__":
    # Small shapes consistent with MLP(input_dim=32, output_dim=16, hidden_dim=512).
    B, D_IN, HID, D_OUT = 16, 32, 512, 16

    key = jax.random.PRNGKey(0)
    kx, kw1, kb1, kw2, kb2 = jax.random.split(key, 5)

    x = jax.random.normal(kx, (B, D_IN), dtype=jnp.float32)
    # Deterministic synthetic parameters (weights stored transposed: (in, out)).
    w1 = jax.random.normal(kw1, (D_IN, HID), dtype=jnp.float32) * 0.05
    b1 = jax.random.normal(kb1, (HID,), dtype=jnp.float32) * 0.01
    gamma = jnp.ones((HID,), dtype=jnp.float32)   # LayerNorm weight init = 1
    beta = jnp.zeros((HID,), dtype=jnp.float32)   # LayerNorm bias init = 0
    w2 = jax.random.normal(kw2, (HID, D_OUT), dtype=jnp.float32) * 0.05
    b2 = jax.random.normal(kb2, (D_OUT,), dtype=jnp.float32) * 0.01

    out = jax.block_until_ready(mlp_forward(x, w1, b1, gamma, beta, w2, b2))
    assert out.shape == (B, D_OUT)

    # Matches a bf16-operand / f32-accumulate reference tightly, and the pure
    # f32 reference within bf16-induced error.
    ref_bf16 = reference_forward(x, w1, b1, gamma, beta, w2, b2, mxu_bf16=True)
    ref_f32 = reference_forward(x, w1, b1, gamma, beta, w2, b2, mxu_bf16=False)
    assert jnp.allclose(out, ref_bf16, atol=5e-3, rtol=5e-3)
    assert jnp.allclose(out, ref_f32, atol=5e-2, rtol=5e-2)

    print("KERNEL_OK")
</pallas_src>

<mosaic_0001>
module attributes {stable_mosaic.version = 11 : i64} {
  func.func @mlp_kernel(%arg0: i32, %arg1: memref<16x128xbf16, #tpu.memory_space<vmem>>, %arg2: memref<128x512xbf16, #tpu.memory_space<vmem>>, %arg3: memref<8x512xf32, #tpu.memory_space<vmem>>, %arg4: memref<512x128xbf16, #tpu.memory_space<vmem>>, %arg5: memref<1x128xf32, #tpu.memory_space<vmem>>, %arg6: memref<16x128xf32, #tpu.memory_space<vmem>>) attributes {dimension_semantics = [#tpu.dimension_semantics<parallel>], iteration_bounds = array<i64: 1>, scalar_prefetch = 0 : i64, scratch_operands = 0 : i64, tpu.core_type = #tpu.core_type<tc>, window_params = [{transform_indices = @transform_0, window_bounds = array<i64: 16, 128>}, {pipeline_mode = #tpu.pipeline_mode<synchronous>, transform_indices = @transform_1, window_bounds = array<i64: 128, 512>}, {pipeline_mode = #tpu.pipeline_mode<synchronous>, transform_indices = @transform_2, window_bounds = array<i64: 8, 512>}, {pipeline_mode = #tpu.pipeline_mode<synchronous>, transform_indices = @transform_3, window_bounds = array<i64: 512, 128>}, {pipeline_mode = #tpu.pipeline_mode<synchronous>, transform_indices = @transform_4, window_bounds = array<i64: 1, 128>}, {transform_indices = @transform_5, window_bounds = array<i64: 16, 128>}]} {
    %c0 = arith.constant 0 : index
    %c0_0 = arith.constant 0 : index
    %0 = vector.load %arg1[%c0, %c0_0] : memref<16x128xbf16, #tpu.memory_space<vmem>>, vector<16x128xbf16>
    %c0_1 = arith.constant 0 : index
    %c0_2 = arith.constant 0 : index
    %1 = vector.load %arg2[%c0_1, %c0_2] : memref<128x512xbf16, #tpu.memory_space<vmem>>, vector<128x512xbf16>
    %cst = arith.constant dense<0.000000e+00> : vector<16x512xf32>
    %2 = tpu.matmul %0, %1, %cst {dimension_numbers = #tpu.dot_dimension_numbers<[1], [0], [0], [1], [0, 0, 1, 1], [], []>} : vector<16x128xbf16>, vector<128x512xbf16>, vector<16x512xf32> -> vector<16x512xf32>
    %c0_3 = arith.constant 0 : index
    %c0_4 = arith.constant 0 : index
    %3 = vector.load %arg3[%c0_3, %c0_4] : memref<8x512xf32, #tpu.memory_space<vmem>>, vector<8x512xf32>
    %4 = vector.extract_strided_slice %3 {offsets = [0, 0], sizes = [1, 512], strides = [1, 1]} : vector<8x512xf32> to vector<1x512xf32>
    %5 = vector.extract_strided_slice %3 {offsets = [1, 0], sizes = [1, 512], strides = [1, 1]} : vector<8x512xf32> to vector<1x512xf32>
    %6 = vector.extract_strided_slice %3 {offsets = [2, 0], sizes = [1, 512], strides = [1, 1]} : vector<8x512xf32> to vector<1x512xf32>
    %7 = vector.broadcast %4 : vector<1x512xf32> to vector<16x512xf32>
    %8 = arith.addf %2, %7 : vector<16x512xf32>
    %cst_5 = arith.constant dense<0.000000e+00> : vector<16xf32>
    %9 = vector.multi_reduction <add>, %8, %cst_5 [1] : vector<16x512xf32> to vector<16xf32>
    %10 = vector.shape_cast %9 : vector<16xf32> to vector<16x1xf32>
    %11 = arith.mulf %8, %8 : vector<16x512xf32>
    %cst_6 = arith.constant dense<0.000000e+00> : vector<16xf32>
    %12 = vector.multi_reduction <add>, %11, %cst_6 [1] : vector<16x512xf32> to vector<16xf32>
    %13 = vector.shape_cast %12 : vector<16xf32> to vector<16x1xf32>
    %cst_7 = arith.constant 0.001953125 : f32
    %14 = vector.broadcast %cst_7 : f32 to vector<16x1xf32>
    %15 = arith.mulf %10, %14 : vector<16x1xf32>
    %cst_8 = arith.constant 0.001953125 : f32
    %16 = vector.broadcast %cst_8 : f32 to vector<16x1xf32>
    %17 = arith.mulf %13, %16 : vector<16x1xf32>
    %18 = arith.mulf %15, %15 : vector<16x1xf32>
    %19 = arith.subf %17, %18 : vector<16x1xf32>
    %cst_9 = arith.constant 9.99999974E-6 : f32
    %20 = vector.broadcast %cst_9 : f32 to vector<16x1xf32>
    %21 = arith.addf %19, %20 : vector<16x1xf32>
    %22 = math.rsqrt %21 : vector<16x1xf32>
    %23 = vector.broadcast %5 : vector<1x512xf32> to vector<16x512xf32>
    %24 = vector.broadcast %22 : vector<16x1xf32> to vector<16x512xf32>
    %25 = arith.mulf %23, %24 : vector<16x512xf32>
    %26 = vector.broadcast %15 : vector<16x1xf32> to vector<16x512xf32>
    %27 = arith.mulf %26, %25 : vector<16x512xf32>
    %28 = vector.broadcast %6 : vector<1x512xf32> to vector<16x512xf32>
    %29 = arith.subf %28, %27 : vector<16x512xf32>
    %30 = arith.mulf %8, %25 : vector<16x512xf32>
    %31 = arith.addf %30, %29 : vector<16x512xf32>
    %cst_10 = arith.constant 0.000000e+00 : f32
    %32 = vector.broadcast %cst_10 : f32 to vector<16x512xf32>
    %33 = arith.maximumf %31, %32 : vector<16x512xf32>
    %34 = arith.truncf %33 : vector<16x512xf32> to vector<16x512xbf16>
    %c0_11 = arith.constant 0 : index
    %c0_12 = arith.constant 0 : index
    %35 = vector.load %arg4[%c0_11, %c0_12] : memref<512x128xbf16, #tpu.memory_space<vmem>>, vector<512x128xbf16>
    %cst_13 = arith.constant dense<0.000000e+00> : vector<16x128xf32>
    %36 = tpu.matmul %34, %35, %cst_13 {dimension_numbers = #tpu.dot_dimension_numbers<[1], [0], [0], [1], [0, 0, 1, 1], [], []>} : vector<16x512xbf16>, vector<512x128xbf16>, vector<16x128xf32> -> vector<16x128xf32>
    %c0_14 = arith.constant 0 : index
    %c0_15 = arith.constant 0 : index
    %37 = vector.load %arg5[%c0_14, %c0_15] : memref<1x128xf32, #tpu.memory_space<vmem>>, vector<1x128xf32>
    %38 = vector.broadcast %37 : vector<1x128xf32> to vector<16x128xf32>
    %39 = arith.addf %36, %38 : vector<16x128xf32>
    %c0_16 = arith.constant 0 : index
    %c0_17 = arith.constant 0 : index
    %40 = vector.load %arg6[%c0_16, %c0_17] : memref<16x128xf32, #tpu.memory_space<vmem>>, vector<16x128xf32>
    tpu.vector_store %arg6[%c0_16, %c0_17], %39 {strides = array<i32>} : memref<16x128xf32, #tpu.memory_space<vmem>>, vector<16x128xf32>,
    return
  }
  func.func @transform_0(%arg0: i32) -> (i32, i32) {
    %c0_i32 = arith.constant 0 : i32
    %c0_i32_0 = arith.constant 0 : i32
    return %arg0, %c0_i32 : i32, i32
  }
  func.func @transform_1(%arg0: i32) -> (i32, i32) {
    %c0_i32 = arith.constant 0 : i32
    %c0_i32_0 = arith.constant 0 : i32
    %c0_i32_1 = arith.constant 0 : i32
    return %c0_i32, %c0_i32_0 : i32, i32
  }
  func.func @transform_2(%arg0: i32) -> (i32, i32) {
    %c0_i32 = arith.constant 0 : i32
    %c0_i32_0 = arith.constant 0 : i32
    %c0_i32_1 = arith.constant 0 : i32
    return %c0_i32, %c0_i32_0 : i32, i32
  }
  func.func @transform_3(%arg0: i32) -> (i32, i32) {
    %c0_i32 = arith.constant 0 : i32
    %c0_i32_0 = arith.constant 0 : i32
    %c0_i32_1 = arith.constant 0 : i32
    return %c0_i32, %c0_i32_0 : i32, i32
  }
  func.func @transform_4(%arg0: i32) -> (i32, i32) {
    %c0_i32 = arith.constant 0 : i32
    %c0_i32_0 = arith.constant 0 : i32
    %c0_i32_1 = arith.constant 0 : i32
    return %c0_i32, %c0_i32_0 : i32, i32
  }
  func.func @transform_5(%arg0: i32) -> (i32, i32) {
    %c0_i32 = arith.constant 0 : i32
    %c0_i32_0 = arith.constant 0 : i32
    return %arg0, %c0_i32 : i32, i32
  }
}

</mosaic_0001>

<bundles_post_ra>
// kernel: mlp_forward.1
= control target key start
LH: loop header
LB: loop body
LE: loop exit
PB: predicated region body
PF: predicated region fallthrough
CT: control target
= control target key end

     0   :  { %v1036_v2 = vmov 0   ;;  %s1356_s0 = inlined_call_operand.vmem [shape: bf16[16,128], index: 0, kind: input, shape index: {}]   ;;  %s1357_s1 = inlined_call_operand.vmem [shape: bf16[128,512], index: 1, kind: input, shape index: {}]   ;;  %s1358_s2 = inlined_call_operand.vmem [shape: f32[8,512], index: 2, kind: input, shape index: {}]   ;;  %s1359_s3 = inlined_call_operand.vmem [shape: bf16[512,128], index: 3, kind: input, shape index: {}]   ;;  %s1360_s4 = inlined_call_operand.vmem [shape: f32[1,128], index: 4, kind: input, shape index: {}]   ;;  %s1361_s5 = inlined_call_operand.hbm [shape: f32[16,128], index: 5, kind: output, shape index: {}]  }
   0x1   :  { %v929_v0 = vld [vmem:[%s1357_s1 + $0xe4] ss:$16 sps:$4 sm:$0xff]   ;;  %v931_v1 = vld [vmem:[%s1357_s1 + $0xec] ss:$16 sps:$4 sm:$0xff]   ;;  %274 = vmatprep.mubr.bf16.mxu0 %v1036_v2  ;;  %317 = vmatprep.mubr.bf16.mxu1 %v1036_v2  ;;  %v933_v3 = vld [vmem:[%s1357_s1 + $0xe0] ss:$16 sps:$4 sm:$0xff]  }
   0x2   :  { %242 = vmatprep.subr.bf16.mxu0 %v929_v0  ;;  %v934_v4 = vld [vmem:[%s1357_s1 + $0xe8] ss:$16 sps:$4 sm:$0xff]   ;;  %285 = vmatprep.subr.bf16.mxu1 %v931_v1  ;;  %v935_v5 = vld [vmem:[%s1357_s1 + $0xc4] ss:$16 sps:$4 sm:$0xff]   ;;  %v937_v6 = vld [vmem:[%s1357_s1 + $0xcc] ss:$16 sps:$4 sm:$0xff]  }
   0x3   :  { %243 = vmatpush1.bf16.msra.mxu0 %v933_v3  ;;  %286 = vmatpush1.bf16.msra.mxu1 %v934_v4  ;;  %v939_v7 = vld [vmem:[%s1357_s1 + $0xc0] ss:$16 sps:$4 sm:$0xff]   ;;  %v940_v8 = vld [vmem:[%s1357_s1 + $0xc8] ss:$16 sps:$4 sm:$0xff]   ;;  %v941_v9 = vld [vmem:[%s1357_s1 + $0xa4] ss:$16 sps:$4 sm:$0xff]  }
   0x4   :  { %244 = vmatprep.subr.bf16.mxu0 %v935_v5  ;;  %287 = vmatprep.subr.bf16.mxu1 %v937_v6  ;;  %v943_v10 = vld [vmem:[%s1357_s1 + $0xac] ss:$16 sps:$4 sm:$0xff]   ;;  %v945_v11 = vld [vmem:[%s1357_s1 + $0xa0] ss:$16 sps:$4 sm:$0xff]   ;;  %v946_v12 = vld [vmem:[%s1357_s1 + $0xa8] ss:$16 sps:$4 sm:$0xff]  }
   0x5   :  { %v947_v13 = vld [vmem:[%s1357_s1 + $0x84] ss:$16 sps:$4 sm:$0xff]   ;;  %v949_v14 = vld [vmem:[%s1357_s1 + $0x8c] ss:$16 sps:$4 sm:$0xff]   ;;  %v951_v15 = vld [vmem:[%s1357_s1 + $0x80] ss:$16 sps:$4 sm:$0xff]  }
   0x6   :  { %v952_v16 = vld [vmem:[%s1357_s1 + $0x88] ss:$16 sps:$4 sm:$0xff]   ;;  %v953_v17 = vld [vmem:[%s1357_s1 + $0x64] ss:$16 sps:$4 sm:$0xff]   ;;  %v955_v18 = vld [vmem:[%s1357_s1 + $0x6c] ss:$16 sps:$4 sm:$0xff]  }
   0x7   :  { %245 = vmatpush1.bf16.msra.mxu0 %v939_v7  ;;  %288 = vmatpush1.bf16.msra.mxu1 %v940_v8  ;;  %v957_v19 = vld [vmem:[%s1357_s1 + $0x60] ss:$16 sps:$4 sm:$0xff]   ;;  %v958_v20 = vld [vmem:[%s1357_s1 + $0x68] ss:$16 sps:$4 sm:$0xff]   ;;  %v959_v21 = vld [vmem:[%s1357_s1 + $0x44] ss:$16 sps:$4 sm:$0xff]  }
   0x8   :  { %246 = vmatprep.subr.bf16.mxu0 %v941_v9  ;;  %289 = vmatprep.subr.bf16.mxu1 %v943_v10  ;;  %v961_v22 = vld [vmem:[%s1357_s1 + $0x4c] ss:$16 sps:$4 sm:$0xff]   ;;  %v963_v23 = vld [vmem:[%s1357_s1 + $0x40] ss:$16 sps:$4 sm:$0xff]   ;;  %v964_v24 = vld [vmem:[%s1357_s1 + $0x48] ss:$16 sps:$4 sm:$0xff]  }
   0x9   :  { %v965_v25 = vld [vmem:[%s1357_s1 + $0x24] ss:$16 sps:$4 sm:$0xff]   ;;  %v967_v26 = vld [vmem:[%s1357_s1 + $0x2c] ss:$16 sps:$4 sm:$0xff]   ;;  %v969_v27 = vld [vmem:[%s1357_s1 + $0x20] ss:$16 sps:$4 sm:$0xff]  }
   0xa   :  { %v970_v28 = vld [vmem:[%s1357_s1 + $0x28] ss:$16 sps:$4 sm:$0xff]   ;;  %v971_v29 = vld [vmem:[%s1357_s1 + $0x4] ss:$16 sps:$4 sm:$0xff]   ;;  %v973_v30 = vld [vmem:[%s1357_s1 + $0xc] ss:$16 sps:$4 sm:$0xff]  }
   0xb   :  { %247 = vmatpush1.bf16.msra.mxu0 %v945_v11  ;;  %290 = vmatpush1.bf16.msra.mxu1 %v946_v12  ;;  %v975_v31 = vld [vmem:[%s1357_s1] ss:$16 sps:$4 sm:$0xff]   ;;  %v976_v32 = vld [vmem:[%s1357_s1 + $0x8] ss:$16 sps:$4 sm:$0xff]  }
   0xc   :  { %248 = vmatprep.subr.bf16.mxu0 %v947_v13  ;;  %291 = vmatprep.subr.bf16.mxu1 %v949_v14  ;;  %v977_v33 = vld [vmem:[%s1356_s0] sm:$0xff]  }
   0xf   :  { %249 = vmatpush1.bf16.msra.mxu0 %v951_v15  ;;  %292 = vmatpush1.bf16.msra.mxu1 %v952_v16 }
  0x10   :  { %250 = vmatprep.subr.bf16.mxu0 %v953_v17  ;;  %293 = vmatprep.subr.bf16.mxu1 %v955_v18 }
  0x13   :  { %251 = vmatpush1.bf16.msra.mxu0 %v957_v19  ;;  %294 = vmatpush1.bf16.msra.mxu1 %v958_v20 }
  0x14   :  { %252 = vmatprep.subr.bf16.mxu0 %v959_v21  ;;  %295 = vmatprep.subr.bf16.mxu1 %v961_v22 }
  0x17   :  { %253 = vmatpush1.bf16.msra.mxu0 %v963_v23  ;;  %296 = vmatpush1.bf16.msra.mxu1 %v964_v24 }
  0x18   :  { %254 = vmatprep.subr.bf16.mxu0 %v965_v25  ;;  %297 = vmatprep.subr.bf16.mxu1 %v967_v26 }
  0x1b   :  { %255 = vmatpush1.bf16.msra.mxu0 %v969_v27  ;;  %298 = vmatpush1.bf16.msra.mxu1 %v970_v28 }
  0x1c   :  { %256 = vmatprep.subr.bf16.mxu0 %v971_v29  ;;  %299 = vmatprep.subr.bf16.mxu1 %v973_v30 }
  0x1f   :  { %257 = vmatpush1.bf16.msra.mxu0 %v975_v31  ;;  %300 = vmatpush1.bf16.msra.mxu1 %v976_v32 }
  0x22   :  { %275 = vmatmul.mubr.bf16.vlgmr.msra.gmra.mxu0 %v977_v33  ;;  %318 = vmatmul.mubr.bf16.vlgmr.msra.gmra.mxu1 %v977_v33 }
  0x23   :  { %10 = vsyncpa [#allocation3], 0  ;;  %v60_v34 = vlaneseq  ;;  %v1175_v37 = vld [vmem:[%s1358_s2] sm:$0xff]  ;;  %v1180_v38 = vld [vmem:[%s1358_s2 + $0x10] sm:$0xff]  ;;  %s1037_s23 = smov [#allocation2]  }
  0x24   :  { %v1185_v39 = vld [vmem:[%s1358_s2 + $0x8] sm:$0xff]  ;;  %v1193_v43 = vld [vmem:[%s1358_s2 + $0x18] sm:$0xff]  ;;  %v982_v21 = vld [vmem:[%s1359_s3 + $0x70] sm:$0xff]   ;;  %s804_s24 = sshll.u32 %s1037_s23, 4  ;;  %s805_s24 = int_to_ptr.vmem [resolvable:$true] %s804_s24 }
  0x25   :  { %v1169_v35 = vshrl.u32 %v60_v34, 7  ;;  %v978_v17 = vld [vmem:[%s1359_s3 + $0x78] sm:$0xff]   ;;  %v983_v22 = vld [vmem:[%s1359_s3 + $0xf0] sm:$0xff]   ;;  %v986_v25 = vld [vmem:[%s1359_s3 + $0x68] sm:$0xff]   ;;  %p1019_p1 = scmp.lt.s32.totalorder %s805_s24, %s805_s24 }
  0x26   :  { %v979_v18 = vld [vmem:[%s1359_s3 + $0xf8] sm:$0xff]   ;;  %881 = vmatprep.subr.bf16.mxu0 %v978_v17  ;;  %v984_v23 = vld [vmem:[%s1359_s3 + $0x30] sm:$0xff]   ;;  %v987_v26 = vld [vmem:[%s1359_s3 + $0xe8] sm:$0xff]  }
  0x27   :  { %v62_v36 = vsub.s32 0, %v1169_v35  ;;  %v980_v19 = vld [vmem:[%s1359_s3 + $0x38] sm:$0xff]   ;;  %903 = vmatprep.subr.bf16.mxu1 %v979_v18  ;;  %v985_v24 = vld [vmem:[%s1359_s3 + $0xb0] sm:$0xff]   ;;  %v988_v27 = vld [vmem:[%s1359_s3 + $0x28] sm:$0xff]  }
  0x28   :  { %v981_v20 = vld [vmem:[%s1359_s3 + $0xb8] sm:$0xff]   ;;  %882 = vmatpush3.bf16.msra.mxu0 %v980_v19  ;;  %v989_v28 = vld [vmem:[%s1359_s3 + $0xa8] sm:$0xff]   ;;  %v990_v29 = vld [vmem:[%s1359_s3 + $0x60] sm:$0xff]  }
  0x29   :  { %v63_v40 = vrot.slane %v1175_v37, %v62_v36  ;;  %v71_v41 = vrot.slane %v1180_v38, %v62_v36  ;;  %v67_v42 = vrot.slane %v1185_v39, %v62_v36  ;;  %v75_v49 = vrot.slane %v1193_v43, %v62_v36  ;;  %904 = vmatpush3.bf16.msra.mxu1 %v981_v20  ;;  %v991_v30 = vld [vmem:[%s1359_s3 + $0xe0] sm:$0xff]   ;;  %v994_v33 = vld [vmem:[%s1359_s3 + $0x58] sm:$0xff]  }
  0x2a   :  { %883 = vmatprep.subr.bf16.mxu0 %v982_v21  ;;  %905 = vmatprep.subr.bf16.mxu1 %v983_v22  ;;  %v992_v31 = vld [vmem:[%s1359_s3 + $0x20] sm:$0xff]   ;;  %v995_v34 = vld [vmem:[%s1359_s3 + $0xd8] sm:$0xff]  }
  0x2b   :  { %v993_v32 = vld [vmem:[%s1359_s3 + $0xa0] sm:$0xff]   ;;  %v996_v36 = vld [vmem:[%s1359_s3 + $0x18] sm:$0xff]  }
  0x2c   :  { %884 = vmatpush3.bf16.msra.mxu0 %v984_v23 }
  0x2d   :  { %906 = vmatpush3.bf16.msra.mxu1 %v985_v24  ;;  %885 = vmatprep.subr.bf16.mxu0 %v986_v25 }
  0x2e   :  { %907 = vmatprep.subr.bf16.mxu1 %v987_v26 }
  0x30   :  { %886 = vmatpush3.bf16.msra.mxu0 %v988_v27 }
  0x31   :  { %908 = vmatpush3.bf16.msra.mxu1 %v989_v28  ;;  %887 = vmatprep.subr.bf16.mxu0 %v990_v29 }
  0x32   :  { %909 = vmatprep.subr.bf16.mxu1 %v991_v30 }
  0x34   :  { %888 = vmatpush3.bf16.msra.mxu0 %v992_v31 }
  0x35   :  { %910 = vmatpush3.bf16.msra.mxu1 %v993_v32  ;;  %889 = vmatprep.subr.bf16.mxu0 %v994_v33 }
  0x36   :  { %911 = vmatprep.subr.bf16.mxu1 %v995_v34 }
  0x38   :  { %890 = vmatpush3.bf16.msra.mxu0 %v996_v36 }
  0xe2   :  { %v276_v44 = vpop.f32.mrf.mxu0  ;;  %v319_v45 = vpop.f32.mrf.mxu1 }
  0xe3   :  { %v1195_v46 = vadd.f32 %v276_v44, %v63_v40  ;;  %v1197_v47 = vadd.f32 %v319_v45, %v71_v41  ;;  %v1000_v44 = vld [vmem:[%s1359_s3 + $0x10] sm:$0xff]  }
  0xe4   :  { %v278_v48 = vpop.f32.mrf.mxu0  ;;  %v321_v50 = vpop.f32.mrf.mxu1  ;;  %v1001_v45 = vld [vmem:[%s1359_s3 + $0x90] sm:$0xff]  }
  0xe5   :  { %v1200_v51 = vadd.f32 %v278_v48, %v67_v42  ;;  %v338_v57 = vmul.f32 %v1195_v46, %v1195_v46  ;;  %v1210_v58 = vadd.f32 %v321_v50, %v75_v49  ;;  %v340_v61 = vmul.f32 %v1197_v47, %v1197_v47  ;;  %v1002_v48 = vld [vmem:[%s1359_s3 + $0x48] sm:$0xff]  }
  0xe6   :  { %v280_v52 = vpop.f32.mrf.mxu0  ;;  %v323_v53 = vpop.f32.mrf.mxu1  ;;  %v1004_v50 = vld [vmem:[%s1359_s3 + $0x8] sm:$0xff]  }
  0xe7   :  { %v339_v54 = vmul.f32 %v1200_v51, %v1200_v51  ;;  %v1204_v55 = vadd.f32 %v280_v52, %v63_v40  ;;  %v328_v56 = vadd.f32 %v1200_v51, %v1195_v46  ;;  %v1214_v62 = vadd.f32 %v323_v53, %v71_v41  ;;  %v997_v40 = vld [vmem:[%s1359_s3 + $0x98] sm:$0xff]   ;;  %v998_v41 = vld [vmem:[%s1359_s3 + $0x50] sm:$0xff]   ;;  %v1005_v52 = vld [vmem:[%s1359_s3 + $0x88] sm:$0xff]  }
  0xe8   :  { %v282_v59 = vpop.f32.mrf.mxu0  ;;  %v325_v60 = vpop.f32.mrf.mxu1  ;;  %v341_v7 = vmul.f32 %v1210_v58, %v1210_v58  ;;  %912 = vmatpush3.bf16.msra.mxu1 %v997_v40  ;;  %891 = vmatprep.subr.bf16.mxu0 %v998_v41  ;;  %v1006_v53 = vld [vmem:[%s1359_s3 + $0x40] sm:$0xff]  }
  0xe9   :  { %v1216_v63 = vadd.f32 %v282_v59, %v67_v42  ;;  %v329_v0 = vadd.f32 %v328_v56, %v1197_v47  ;;  %v346_v1 = vadd.f32 %v339_v54, %v338_v57  ;;  %v342_v2 = vmul.f32 %v1204_v55, %v1204_v55  ;;  %v999_v42 = vld [vmem:[%s1359_s3 + $0xd0] sm:$0xff]   ;;  %892 = vmatpush3.bf16.msra.mxu0 %v1000_v44  ;;  %v1007_v54 = vld [vmem:[%s1359_s3 + $0xc0] sm:$0xff]  }
  0xea   :  { %v1225_v5 = vadd.f32 %v325_v60, %v75_v49  ;;  %v344_v9 = vmul.f32 %v1214_v62, %v1214_v62  ;;  %913 = vmatprep.subr.bf16.mxu1 %v999_v42  ;;  %v1003_v49 = vld [vmem:[%s1359_s3 + $0xc8] sm:$0xff]   ;;  %893 = vmatprep.subr.bf16.mxu0 %v1002_v48  ;;  %v1008_v56 = vld [vmem:[%s1359_s3] sm:$0xff]  }
  0xeb   :  { %v333_v3 = vadd.f32 %v1216_v63, %v1204_v55  ;;  %v343_v4 = vmul.f32 %v1216_v63, %v1216_v63  ;;  %v330_v6 = vadd.f32 %v329_v0, %v1210_v58  ;;  %v347_v8 = vadd.f32 %v346_v1, %v340_v61  ;;  %v1009_v57 = vld [vmem:[%s1359_s3 + $0x80] sm:$0xff]  }
  0xec   :  { %v345_v14 = vmul.f32 %v1225_v5, %v1225_v5  ;;  %914 = vmatpush3.bf16.msra.mxu1 %v1001_v45 }
  0xed   :  { %v334_v10 = vadd.f32 %v333_v3, %v1214_v62  ;;  %v351_v11 = vadd.f32 %v343_v4, %v342_v2  ;;  %331 = vadd.xlane.f32.xlu0 %v330_v6  ;;  %v348_v12 = vadd.f32 %v347_v8, %v341_v7  ;;  %915 = vmatprep.subr.bf16.mxu1 %v1003_v49 }
  0xee   :  { %894 = vmatpush3.bf16.msra.mxu0 %v1004_v50 }
  0xef   :  { %v335_v13 = vadd.f32 %v334_v10, %v1225_v5  ;;  %v352_v15 = vadd.f32 %v351_v11, %v344_v9  ;;  %349 = vadd.xlane.f32.xlu1 %v348_v12  ;;  %895 = vmatprep.subr.bf16.mxu0 %v1006_v53  ;;  %v370_v12 = vsub.s32 1, %v1169_v35 }
  0xf0   :  { %916 = vmatpush3.bf16.msra.mxu1 %v1005_v52 }
  0xf1   :  { %v353_v16 = vadd.f32 %v352_v15, %v345_v14  ;;  %336 = vadd.xlane.f32.xlu0 %v335_v13  ;;  %917 = vmatprep.subr.bf16.mxu1 %v1007_v54  ;;  %v402_v13 = vsub.s32 2, %v1169_v35  ;;  %v371_v14 = vrot.slane %v1175_v37, %v370_v12  ;;  %v379_v15 = vrot.slane %v1180_v38, %v370_v12 }
  0xf2   :  { %896 = vmatpush3.bf16.msra.mxu0 %v1008_v56  ;;  %v383_v17 = vrot.slane %v1193_v43, %v370_v12 }
  0xf3   :  { %354 = vadd.xlane.f32.xlu1 %v353_v16  ;;  %v375_v16 = vrot.slane %v1185_v39, %v370_v12  ;;  %v407_v19 = vrot.slane %v1185_v39, %v402_v13  ;;  %v415_v20 = vrot.slane %v1193_v43, %v402_v13  ;;  %v403_v25 = vrot.slane %v1175_v37, %v402_v13 }
  0xf4   :  { %918 = vmatpush3.bf16.msra.mxu1 %v1009_v57  ;;  %v411_v28 = vrot.slane %v1180_v38, %v402_v13 }
 0x176   :  { %v332_v59 = vpop.xlane.xlu0 %331 }
 0x177   :  { %v356_v60 = vmul.f32 0.001953125, %v332_v59 }
 0x178   :  { %v350_v61 = vpop.xlane.xlu1 %349 }
 0x179   :  { %v358_v0 = vmul.f32 0.001953125, %v350_v61  ;;  %v360_v1 = vmul.f32 %v356_v60, %v356_v60 }
 0x17a   :  { %v337_v2 = vpop.xlane.xlu0 %336 }
 0x17b   :  { %v362_v3 = vsub.f32 %v358_v0, %v360_v1  ;;  %v357_v4 = vmul.f32 0.001953125, %v337_v2 }
 0x17c   :  { %v355_v6 = vpop.xlane.xlu1 %354 }
 0x17d   :  { %v364_v7 = vadd.f32 1e-05, %v362_v3  ;;  %v359_v8 = vmul.f32 0.001953125, %v355_v6  ;;  %v361_v9 = vmul.f32 %v357_v4, %v357_v4 }
 0x17f   :  { %1010 = vrsqrt.f32 %v364_v7  ;;  %v363_v10 = vsub.f32 %v359_v8, %v361_v9 }
 0x181   :  { %v365_v11 = vadd.f32 1e-05, %v363_v10 }
 0x183   :  { %1012 = vrsqrt.f32 %v365_v11 }
 0x18c   :  { %v1011_v18 = vpop.eup %1010 }
 0x18d   :  { %v385_v21 = vmul.f32 %v1011_v18, %v375_v16  ;;  %v387_v22 = vmul.f32 %v1011_v18, %v383_v17  ;;  %v384_v23 = vmul.f32 %v1011_v18, %v371_v14  ;;  %v386_v24 = vmul.f32 %v1011_v18, %v379_v15 }
 0x18f   :  { %v393_v35 = vmul.f32 %v385_v21, %v356_v60  ;;  %v395_v26 = vmul.f32 %v387_v22, %v356_v60  ;;  %v425_v29 = vmul.f32 %v385_v21, %v1200_v51  ;;  %v392_v30 = vmul.f32 %v384_v23, %v356_v60 }
 0x190   :  { %v1013_v27 = vpop.eup %1012  ;;  %v394_v31 = vmul.f32 %v386_v24, %v356_v60  ;;  %v427_v43 = vmul.f32 %v387_v22, %v1210_v58  ;;  %v424_v44 = vmul.f32 %v384_v23, %v1195_v46  ;;  %v426_v45 = vmul.f32 %v386_v24, %v1197_v47 }
 0x191   :  { %v389_v32 = vmul.f32 %v1013_v27, %v375_v16  ;;  %v417_v33 = vsub.f32 %v407_v19, %v393_v35  ;;  %v391_v39 = vmul.f32 %v1013_v27, %v383_v17  ;;  %v419_v34 = vsub.f32 %v415_v20, %v395_v26 }
 0x192   :  { %v388_v36 = vmul.f32 %v1013_v27, %v371_v14  ;;  %v416_v40 = vsub.f32 %v403_v25, %v392_v30  ;;  %v390_v41 = vmul.f32 %v1013_v27, %v379_v15  ;;  %v418_v49 = vsub.f32 %v411_v28, %v394_v31  ;;  %v848_v14 = vld [vmem:[%s1360_s4] ss:$0 sm:$0xff]  ;;  %s1014_s4 = scalar_lea.vmem %s805_s24, 256 }
 0x193   :  { %v397_v42 = vmul.f32 %v389_v32, %v357_v4  ;;  %v399_v37 = vmul.f32 %v391_v39, %v357_v4  ;;  %v429_v38 = vmul.f32 %v389_v32, %v1216_v63  ;;  %v433_v51 = vadd.f32 %v425_v29, %v417_v33  ;;  %p1015_p0 = scmp.ne.s32.totalorder %s805_s24, %s1014_s4  ;;  %p1020_p2 = scmp.lt.s32.totalorder %s1014_s4, %s1014_s4 }
 0x194   :  { %v396_v48 = vmul.f32 %v388_v36, %v357_v4  ;;  %v431_v53 = vmul.f32 %v391_v39, %v1225_v5  ;;  %v435_v54 = vadd.f32 %v427_v43, %v419_v34  ;;  %v428_v56 = vmul.f32 %v388_v36, %v1204_v55 }
 0x195   :  { %v421_v50 = vsub.f32 %v407_v19, %v397_v42  ;;  %v423_v52 = vsub.f32 %v415_v20, %v399_v37  ;;  %v432_v57 = vadd.f32 %v424_v44, %v416_v40  ;;  %v398_v59 = vmul.f32 %v390_v41, %v357_v4  ;;  %p1021_p3 = por %p1020_p2, %p1019_p1 }
 0x196   :  { %v420_v58 = vsub.f32 %v403_v25, %v396_v48  ;;  %v430_v47 = vmul.f32 %v390_v41, %v1214_v62  ;;  %v434_v63 = vadd.f32 %v426_v45, %v418_v49  ;;  %v441_v1 = vmax.f32 %v433_v51, 0.0 }
 0x197   :  { %v437_v60 = vadd.f32 %v429_v38, %v421_v50  ;;  %v439_v61 = vadd.f32 %v431_v53, %v423_v52  ;;  %v422_v0 = vsub.f32 %v411_v28, %v398_v59  ;;  %v443_v3 = vmax.f32 %v435_v54, 0.0  ;;  %p1022_p4 = pnand %p1021_p3, %p1015_p0 }
 0x198   :  { %v436_v46 = vadd.f32 %v428_v56, %v420_v58  ;;  %v440_v7 = vmax.f32 %v432_v57, 0.0  ;;  %v442_v55 = vmax.f32 %v434_v63, 0.0 }
 0x199   :  { %v445_v2 = vmax.f32 %v437_v60, 0.0  ;;  %v447_v6 = vmax.f32 %v439_v61, 0.0  ;;  %v438_v5 = vadd.f32 %v430_v47, %v422_v0 }
 0x19a   :  { %v444_v8 = vmax.f32 %v436_v46, 0.0 }
 0x19b   :  { %v449_v9 = vpack.c.bf16 %v445_v2, %v441_v1  ;;  %v451_v10 = vpack.c.bf16 %v447_v6, %v443_v3  ;;  %v446_v12 = vmax.f32 %v438_v5, 0.0 }
 0x19c   :  { %v448_v11 = vpack.c.bf16 %v444_v8, %v440_v7 }
 0x19d   :  { %747 = vmatprep.mubr.bf16.mxu0 %v449_v9  ;;  %788 = vmatprep.mubr.bf16.mxu1 %v451_v10  ;;  %v450_v4 = vpack.c.bf16 %v446_v12, %v442_v55 }
 0x19e   :  { %748 = vmatmul.mubr.bf16.vlgmr.msra.gmra.mxu0 %v448_v11 }
 0x19f   :  { %789 = vmatmul.mubr.bf16.vlgmr.msra.gmra.mxu1 %v450_v4 }
 0x25e   :  { %v897_v13 = vpop.f32.mrf.mxu0 }
 0x25f   :  { %v919_v62 = vpop.f32.mrf.mxu1 }
 0x260   :  { %v898_v15 = vpop.f32.mrf.mxu0 }
 0x261   :  { %v899_v16 = vadd.f32 %v898_v15, %v897_v13  ;;  %v920_v17 = vpop.f32.mrf.mxu1 }
 0x262   :  { %v900_v18 = vpop.f32.mrf.mxu0  ;;  %v921_v20 = vadd.f32 %v920_v17, %v919_v62 }
 0x263   :  { %v750_v19 = vadd.f32 %v899_v16, %v848_v14  ;;  %v922_v21 = vpop.f32.mrf.mxu1 }
 0x264   :  { %v901_v22 = vpop.f32.mrf.mxu0 }
 0x265   :  { %v791_v23 = vadd.f32 %v921_v20, %v750_v19  ;;  %v902_v24 = vadd.f32 %v901_v22, %v900_v18  ;;  %v923_v25 = vpop.f32.mrf.mxu1 }
 0x266   :  { %v924_v26 = vadd.f32 %v923_v25, %v922_v21 }
 0x267   :  { %797 = vst [vmem:[#allocation2] sm:$0xff] %v791_v23  ;;  %v753_v35 = vadd.f32 %v902_v24, %v848_v14 }
 0x269   :  { %v794_v27 = vadd.f32 %v924_v26, %v753_v35 }
 0x26b   :  { %798 = vst [vmem:[#allocation2 + $0x8] sm:$0xff] %v794_v27 }
 0x26c   :  { %1025 = shalt.err (!%p1022_p4)
}
 0x26d   :  { %s1038_s25 = smov 128   ;;  %s1039_s26 = smov 8  }
 0x26e   :  { %810 = dma.vmem_to_hbm [thread:$0]  %s805_s24, 256, %s1361_s5, [#allocation3], %s1038_s25, %s1038_s25, %s1039_s26  }
 0x26f   :  { %1034 = dma.done.wait [#allocation3], 256  }
 0x270   :  { %1035 = vsyncadd [#allocation3], 4294967040 }
 0x271   :  { %814 = vsyncpa [#allocation3], 1 }

</bundles_post_ra>
